<compile_context>
chip_gen: v6e
topology: v6e:2x2x1
jax: 0.10.0
libtpu: 0.0.40
codegen_flags: <defaults>
</compile_context>

<pallas_src>
import jax
import jax.numpy as jnp
from jax.experimental import pallas as pl
from jax.experimental.pallas import tpu as pltpu


NEG_SLOPE = 0.01          # F.leaky_relu default
BN_EPS = 1e-5             # BatchNorm1d default
LANE = 128
MATMUL_DTYPE = jnp.bfloat16   # MXU operand dtype; accumulation stays f32


def _round_up(n, m):
    return ((n + m - 1) // m) * m


# --------------------------------------------------------------------------
# Kernel: whole batch resident in one VMEM tile (BN reduces over batch axis).
# --------------------------------------------------------------------------
def actor_kernel(x_ref, w1_ref, b1_ref, w2_ref, bn_ref, o_ref):
    # fc1 + leaky_relu  (bf16 MXU operands, f32 accumulation)
    x = x_ref[...].astype(MATMUL_DTYPE)
    h = jnp.dot(x, w1_ref[...], preferred_element_type=jnp.float32) + b1_ref[...]
    h = jnp.where(h > 0, h, NEG_SLOPE * h)

    # fc2 + leaky_relu (b2 is row 0 of the packed BN-param array)
    y = jnp.dot(h.astype(MATMUL_DTYPE), w2_ref[...],
                preferred_element_type=jnp.float32) + bn_ref[0:1, :]
    y = jnp.where(y > 0, y, NEG_SLOPE * y)

    # BatchNorm1d (training mode): two-pass stats over the batch axis,
    # biased variance (matches PyTorch's normalization path).
    n = jnp.float32(y.shape[0])
    mean = jnp.sum(y, axis=0, keepdims=True) / n
    centered = y - mean
    var = jnp.sum(centered * centered, axis=0, keepdims=True) / n

    # Fold the affine: one rsqrt per column (EUP), one FMA on the big tile.
    scale = bn_ref[1:2, :] * jax.lax.rsqrt(var + BN_EPS)   # gamma * inv_std
    shift = bn_ref[2:3, :] - mean * scale                  # beta - mean*scale

    # tanh (EUP), lane-dense f32 store
    o_ref[...] = jnp.tanh(y * scale + shift)


# --------------------------------------------------------------------------
# One-time parameter packing (do this at init / outside the per-step jit).
# --------------------------------------------------------------------------
def prepare_params(w1, b1, w2, b2, gamma, beta):
    """Pack params for the kernel exactly once.

    w1: [S, H]  b1: [1, H]  w2: [H, A]  b2/gamma/beta: [1, A].
    Returns (w1_bf16, b1_f32, w2p_bf16[H, A_pad], bn_f32[3, A_pad], A).

    Padded output columns carry zero weight / bias / gamma / beta, so they
    stay exactly 0 through BN + tanh (gamma MUST be padded with 0, not 1).
    """
    A = w2.shape[1]
    A_pad = _round_up(A, LANE)
    w1_p = w1.astype(MATMUL_DTYPE)
    w2_p = jnp.pad(w2, ((0, 0), (0, A_pad - A))).astype(MATMUL_DTYPE)
    bn = jnp.concatenate(
        [jnp.pad(b2,    ((0, 0), (0, A_pad - A))),
         jnp.pad(gamma, ((0, 0), (0, A_pad - A))),   # pad with 0, not 1
         jnp.pad(beta,  ((0, 0), (0, A_pad - A)))], axis=0)  # [3, A_pad] f32
    return w1_p, b1.astype(jnp.float32), w2_p, bn.astype(jnp.float32), A


# --------------------------------------------------------------------------
# Per-call wrapper: single pallas_call, no per-call pad/cast launches.
# --------------------------------------------------------------------------
def actor_forward_padded(state, packed):
    """state: [B, S] f32.  Returns padded [B, A_pad] (padded cols exactly 0)."""
    w1_p, b1, w2_p, bn, _A = packed
    B, S = state.shape
    H = w1_p.shape[1]
    A_pad = w2_p.shape[1]

    full = lambda arr: pl.BlockSpec(arr.shape, lambda: (0,) * arr.ndim)

    cost = pl.CostEstimate(
        flops=2 * B * (S * H + H * A_pad),
        transcendentals=B * A_pad + A_pad,                 # tanh + rsqrt
        bytes_accessed=(state.size * 4 + w1_p.size * 2 + b1.size * 4
                        + w2_p.size * 2 + bn.size * 4 + B * A_pad * 4),
    )

    return pl.pallas_call(
        actor_kernel,
        out_shape=jax.ShapeDtypeStruct((B, A_pad), jnp.float32),
        in_specs=[full(state), full(w1_p), full(b1), full(w2_p), full(bn)],
        out_specs=pl.BlockSpec((B, A_pad), lambda: (0, 0)),
        compiler_params=pltpu.CompilerParams(vmem_limit_bytes=32 << 20),
        cost_estimate=cost,
    )(state, w1_p, b1, w2_p, bn)


def actor_forward_trimmed(state, packed):
    """Convenience: slices the padded output back to [B, A]."""
    return actor_forward_padded(state, packed)[:, :packed[4]]


# --------------------------------------------------------------------------
# Init mirroring the PyTorch module's reset_parameters().
# --------------------------------------------------------------------------
def init_params(key, state_size, action_size, fc1_units=256):
    k1, k2, k3, k4 = jax.random.split(key, 4)
    # hidden_init quirk: fan_in = weight.size()[0] = out_features (fc1_units)
    lim1 = 1.0 / jnp.sqrt(jnp.float32(fc1_units))
    w1 = jax.random.uniform(k1, (state_size, fc1_units), jnp.float32, -lim1, lim1)
    # fc1 bias keeps default Linear init: U(-1/sqrt(in_features), ...)
    limb1 = 1.0 / jnp.sqrt(jnp.float32(state_size))
    b1 = jax.random.uniform(k2, (1, fc1_units), jnp.float32, -limb1, limb1)
    w2 = jax.random.uniform(k3, (fc1_units, action_size), jnp.float32, -0.003, 0.003)
    limb2 = 1.0 / jnp.sqrt(jnp.float32(fc1_units))
    b2 = jax.random.uniform(k4, (1, action_size), jnp.float32, -limb2, limb2)
    gamma = jnp.ones((1, action_size), jnp.float32)    # BatchNorm1d weight
    beta = jnp.zeros((1, action_size), jnp.float32)    # BatchNorm1d bias
    return w1, b1, w2, b2, gamma, beta


# --------------------------------------------------------------------------
# Pure-JAX reference (for correctness checks only).
# --------------------------------------------------------------------------
def actor_reference(state, w1, b1, w2, b2, gamma, beta, matmul_dtype=jnp.float32):
    h = jnp.dot(state.astype(matmul_dtype), w1.astype(matmul_dtype),
                preferred_element_type=jnp.float32) + b1
    h = jnp.where(h > 0, h, NEG_SLOPE * h)
    y = jnp.dot(h.astype(matmul_dtype), w2.astype(matmul_dtype),
                preferred_element_type=jnp.float32) + b2
    y = jnp.where(y > 0, y, NEG_SLOPE * y)
    mean = jnp.mean(y, axis=0, keepdims=True)
    var = jnp.mean((y - mean) ** 2, axis=0, keepdims=True)
    y = (y - mean) / jnp.sqrt(var + BN_EPS) * gamma + beta
    return jnp.tanh(y)


if __name__ == "__main__":
    key = jax.random.PRNGKey(0)
    B, state_size, action_size, fc1_units = 8, 32, 8, 256

    kx, kp = jax.random.split(key)
    state = jax.random.normal(kx, (B, state_size), jnp.float32)
    params = init_params(kp, state_size, action_size, fc1_units)

    # One-time packing (outside the per-step path).
    packed = prepare_params(*params)

    out_padded = jax.block_until_ready(actor_forward_padded(state, packed))
    assert out_padded.shape == (B, _round_up(action_size, LANE))
    # Padded columns must be exactly zero (consumers may keep the padded form).
    assert jnp.all(out_padded[:, action_size:] == 0.0), "padded columns not zero"

    out = out_padded[:, :action_size]
    assert out.shape == (B, action_size)

    # Tight check against a reference using the same bf16 matmul operands.
    ref_match = actor_reference(state, *params, matmul_dtype=MATMUL_DTYPE)
    assert jnp.allclose(out, ref_match, atol=2e-3, rtol=2e-3), "mismatch vs matched reference"

    # Loose sanity check against the pure-f32 PyTorch-equivalent reference
    # (bounds the bf16-matmul numerical drift).
    ref_f32 = actor_reference(state, *params, matmul_dtype=jnp.float32)
    assert jnp.allclose(out, ref_f32, atol=5e-2, rtol=0.0), "drifted from f32 reference"

    print("KERNEL_OK")
</pallas_src>

<mosaic_0001>
module attributes {stable_mosaic.version = 11 : i64} {
  func.func @actor_kernel(%arg0: memref<8x32xf32, #tpu.memory_space<vmem>>, %arg1: memref<32x256xbf16, #tpu.memory_space<vmem>>, %arg2: memref<1x256xf32, #tpu.memory_space<vmem>>, %arg3: memref<256x128xbf16, #tpu.memory_space<vmem>>, %arg4: memref<3x128xf32, #tpu.memory_space<vmem>>, %arg5: memref<8x128xf32, #tpu.memory_space<vmem>>) attributes {dimension_semantics = [], scalar_prefetch = 0 : i64, scratch_operands = 0 : i64, tpu.core_type = #tpu.core_type<tc>} {
    %c0 = arith.constant 0 : index
    %c0_0 = arith.constant 0 : index
    %0 = vector.load %arg0[%c0, %c0_0] : memref<8x32xf32, #tpu.memory_space<vmem>>, vector<8x32xf32>
    %1 = arith.truncf %0 : vector<8x32xf32> to vector<8x32xbf16>
    %c0_1 = arith.constant 0 : index
    %c0_2 = arith.constant 0 : index
    %2 = vector.load %arg1[%c0_1, %c0_2] : memref<32x256xbf16, #tpu.memory_space<vmem>>, vector<32x256xbf16>
    %cst = arith.constant dense<0.000000e+00> : vector<8x256xf32>
    %3 = tpu.matmul %1, %2, %cst {dimension_numbers = #tpu.dot_dimension_numbers<[1], [0], [0], [1], [0, 0, 1, 1], [], []>} : vector<8x32xbf16>, vector<32x256xbf16>, vector<8x256xf32> -> vector<8x256xf32>
    %c0_3 = arith.constant 0 : index
    %c0_4 = arith.constant 0 : index
    %4 = vector.load %arg2[%c0_3, %c0_4] : memref<1x256xf32, #tpu.memory_space<vmem>>, vector<1x256xf32>
    %5 = vector.broadcast %4 : vector<1x256xf32> to vector<8x256xf32>
    %6 = arith.addf %3, %5 : vector<8x256xf32>
    %cst_5 = arith.constant 0.000000e+00 : f32
    %7 = vector.broadcast %cst_5 : f32 to vector<8x256xf32>
    %8 = arith.cmpf ogt, %6, %7 : vector<8x256xf32>
    %cst_6 = arith.constant 0.00999999977 : f32
    %9 = vector.broadcast %cst_6 : f32 to vector<8x256xf32>
    %10 = arith.mulf %9, %6 : vector<8x256xf32>
    %11 = arith.select %8, %6, %10 : vector<8x256xi1>, vector<8x256xf32>
    %12 = arith.truncf %11 : vector<8x256xf32> to vector<8x256xbf16>
    %c0_7 = arith.constant 0 : index
    %c0_8 = arith.constant 0 : index
    %13 = vector.load %arg3[%c0_7, %c0_8] : memref<256x128xbf16, #tpu.memory_space<vmem>>, vector<256x128xbf16>
    %cst_9 = arith.constant dense<0.000000e+00> : vector<8x128xf32>
    %14 = tpu.matmul %12, %13, %cst_9 {dimension_numbers = #tpu.dot_dimension_numbers<[1], [0], [0], [1], [0, 0, 1, 1], [], []>} : vector<8x256xbf16>, vector<256x128xbf16>, vector<8x128xf32> -> vector<8x128xf32>
    %c0_10 = arith.constant 0 : index
    %c0_11 = arith.constant 0 : index
    %15 = vector.load %arg4[%c0_10, %c0_11] : memref<3x128xf32, #tpu.memory_space<vmem>>, vector<1x128xf32>
    %16 = vector.broadcast %15 : vector<1x128xf32> to vector<8x128xf32>
    %17 = arith.addf %14, %16 : vector<8x128xf32>
    %cst_12 = arith.constant 0.000000e+00 : f32
    %18 = vector.broadcast %cst_12 : f32 to vector<8x128xf32>
    %19 = arith.cmpf ogt, %17, %18 : vector<8x128xf32>
    %cst_13 = arith.constant 0.00999999977 : f32
    %20 = vector.broadcast %cst_13 : f32 to vector<8x128xf32>
    %21 = arith.mulf %20, %17 : vector<8x128xf32>
    %22 = arith.select %19, %17, %21 : vector<8x128xi1>, vector<8x128xf32>
    %cst_14 = arith.constant dense<0.000000e+00> : vector<128xf32>
    %23 = vector.multi_reduction <add>, %22, %cst_14 [0] : vector<8x128xf32> to vector<128xf32>
    %24 = vector.shape_cast %23 : vector<128xf32> to vector<1x128xf32>
    %cst_15 = arith.constant 8.000000e+00 : f32
    %25 = vector.broadcast %cst_15 : f32 to vector<1x128xf32>
    %26 = arith.divf %24, %25 : vector<1x128xf32>
    %27 = vector.broadcast %26 : vector<1x128xf32> to vector<8x128xf32>
    %28 = arith.subf %22, %27 : vector<8x128xf32>
    %29 = arith.mulf %28, %28 : vector<8x128xf32>
    %cst_16 = arith.constant dense<0.000000e+00> : vector<128xf32>
    %30 = vector.multi_reduction <add>, %29, %cst_16 [0] : vector<8x128xf32> to vector<128xf32>
    %31 = vector.shape_cast %30 : vector<128xf32> to vector<1x128xf32>
    %cst_17 = arith.constant 8.000000e+00 : f32
    %32 = vector.broadcast %cst_17 : f32 to vector<1x128xf32>
    %33 = arith.divf %31, %32 : vector<1x128xf32>
    %c1 = arith.constant 1 : index
    %c0_18 = arith.constant 0 : index
    %34 = vector.load %arg4[%c1, %c0_18] : memref<3x128xf32, #tpu.memory_space<vmem>>, vector<1x128xf32>
    %cst_19 = arith.constant 9.99999974E-6 : f32
    %35 = vector.broadcast %cst_19 : f32 to vector<1x128xf32>
    %36 = arith.addf %33, %35 : vector<1x128xf32>
    %37 = math.rsqrt %36 : vector<1x128xf32>
    %38 = arith.mulf %34, %37 : vector<1x128xf32>
    %c2 = arith.constant 2 : index
    %c0_20 = arith.constant 0 : index
    %39 = vector.load %arg4[%c2, %c0_20] : memref<3x128xf32, #tpu.memory_space<vmem>>, vector<1x128xf32>
    %40 = arith.mulf %26, %38 : vector<1x128xf32>
    %41 = arith.subf %39, %40 : vector<1x128xf32>
    %42 = vector.broadcast %38 : vector<1x128xf32> to vector<8x128xf32>
    %43 = arith.mulf %22, %42 : vector<8x128xf32>
    %44 = vector.broadcast %41 : vector<1x128xf32> to vector<8x128xf32>
    %45 = arith.addf %43, %44 : vector<8x128xf32>
    %46 = math.tanh %45 : vector<8x128xf32>
    %c0_21 = arith.constant 0 : index
    %c0_22 = arith.constant 0 : index
    %47 = vector.load %arg5[%c0_21, %c0_22] : memref<8x128xf32, #tpu.memory_space<vmem>>, vector<8x128xf32>
    tpu.vector_store %arg5[%c0_21, %c0_22], %46 {strides = array<i32>} : memref<8x128xf32, #tpu.memory_space<vmem>>, vector<8x128xf32>,
    return
  }
}

</mosaic_0001>

<bundles_post_ra>
// kernel: tpu_custom_call.1
= control target key start
LH: loop header
LB: loop body
LE: loop exit
PB: predicated region body
PF: predicated region fallthrough
CT: control target
= control target key end

     0   :  { %10 = vsyncpa [#allocation3], 0  ;;  %s608_s0 = inlined_call_operand.hbm [shape: f32[8,32], index: 0, kind: input, shape index: {}]   ;;  %s609_s1 = inlined_call_operand.hbm [shape: bf16[32,256], index: 1, kind: input, shape index: {}]   ;;  %s610_s2 = inlined_call_operand.vmem [shape: f32[1,256], index: 2, kind: input, shape index: {}]   ;;  %s611_s3 = inlined_call_operand.hbm [shape: bf16[256,128], index: 3, kind: input, shape index: {}]   ;;  %s612_s4 = inlined_call_operand.vmem [shape: f32[3,128], index: 4, kind: input, shape index: {}]   ;;  %s613_s5 = inlined_call_operand.hbm [shape: f32[8,128], index: 5, kind: output, shape index: {}]  }
   0x1   :  { %11 = vsyncpa [#allocation6], 0 }
   0x2   :  { %12 = vsyncpa [#allocation4], 0  ;;  %s545_s18 = smov [#allocation5]  }
   0x3   :  { %s28_s19 = sshll.u32 %s545_s18, 4  ;;  %s29_s19 = int_to_ptr.vmem [resolvable:$true] %s28_s19 }
   0x4   :  { %s467_s20 = scalar_lea.vmem %s29_s19, 512  ;;  %p472_p1 = scmp.lt.s32.totalorder %s29_s19, %s29_s19 }
   0x5   :  { %p468_p0 = scmp.ne.s32.totalorder %s29_s19, %s467_s20  ;;  %p473_p2 = scmp.lt.s32.totalorder %s467_s20, %s467_s20 }
   0x7   :  { %p474_p3 = por %p473_p2, %p472_p1 }
   0x9   :  { %p475_p4 = pnand %p474_p3, %p468_p0 }
   0xb   :  { %478 = shalt.err (!%p475_p4)
}
   0xc   :  { %s546_s21 = smov 128   ;;  %s547_s22 = smov 8  }
   0xd   :  { %34 = dma.hbm_to_vmem [thread:$0]  %s609_s1, 512, %s29_s19, [#allocation6], %s546_s21, %s546_s21, %s547_s22  }
   0xe   :  { %s548_s25 = smov [#allocation2]   ;;  %s549_s27 = smov [#allocation7]  }
   0xf   :  { %s19_s26 = sshll.u32 %s548_s25, 4  ;;  %s42_s28 = sshll.u32 %s549_s27, 4  ;;  %s20_s26 = int_to_ptr.vmem [resolvable:$true] %s19_s26  ;;  %s43_s28 = int_to_ptr.vmem [resolvable:$true] %s42_s28 }
  0x10   :  { %s487_s29 = scalar_lea.vmem %s20_s26, 128  ;;  %p492_p6 = scmp.lt.s32.totalorder %s20_s26, %s20_s26 }
  0x11   :  { %p488_p5 = scmp.ne.s32.totalorder %s20_s26, %s487_s29  ;;  %p493_p7 = scmp.lt.s32.totalorder %s487_s29, %s487_s29 }
  0x13   :  { %p494_p8 = por %p493_p7, %p492_p6 }
  0x15   :  { %p495_p9 = pnand %p494_p8, %p488_p5 }
  0x17   :  { %498 = shalt.err (!%p495_p9)
}
  0x18   :  { %22 = dma.hbm_to_vmem [thread:$0]  %s608_s0, 128, %s20_s26, [#allocation3]  }
  0x19   :  { %s507_s7 = scalar_lea.vmem %s43_s28, 2048  ;;  %p512_p11 = scmp.lt.s32.totalorder %s43_s28, %s43_s28 }
  0x1a   :  { %p508_p10 = scmp.ne.s32.totalorder %s43_s28, %s507_s7  ;;  %p513_p12 = scmp.lt.s32.totalorder %s507_s7, %s507_s7 }
  0x1c   :  { %p514_p13 = por %p513_p12, %p512_p11 }
  0x1e   :  { %p515_p0 = pnand %p514_p13, %p508_p10 }
  0x20   :  { %518 = shalt.err (!%p515_p0)
}
  0x21   :  { %s550_s1 = smov 64   ;;  %s551_s8 = smov 4  }
  0x22   :  { %48 = dma.hbm_to_vmem [thread:$0]  %s611_s3, 2048, %s43_s28, [#allocation6], %s550_s1, %s550_s1, %s551_s8  }
  0x23   :  { %539 = dma.done.wait [#allocation3], 128  }
  0x24   :  { %540 = vsyncadd [#allocation3], 4294967168 }
  0x25   :  { %541 = dma.done.wait [#allocation6], 2560  }
  0x26   :  { %542 = vsyncadd [#allocation6], 4294964736  ;;  %v552_v0 = vmov 0   ;;  %v433_v1 = vld [vmem:[#allocation5 + $0x14] ss:$8 sps:$4 sm:$0xff]   ;;  %vm99_vm0 = vcmask 261120   ;;  %v69_v23 = vlaneseq }
  0x27   :  { %135 = vmatprep.mubr.bf16.mxu0 %v552_v0  ;;  %v435_v2 = vld [vmem:[#allocation5 + $0x10] ss:$8 sps:$4 sm:$0xff]   ;;  %115 = vmatprep.subr.bf16.mxu0 %v433_v1  ;;  %v436_v3 = vld [vmem:[#allocation5 + $0x4] ss:$8 sps:$4 sm:$0xff]   ;;  %v438_v4 = vld [vmem:[#allocation5] ss:$8 sps:$4 sm:$0xff]  }
  0x28   :  { %v61_v5 = vld [vmem:[#allocation2] sm:$0xff]  ;;  %116 = vmatpush1.bf16.msra.mxu0 %v435_v2  ;;  %v441_v8 = vld [vmem:[#allocation7 + $0x70] sm:$0xff]   ;;  %v443_v11 = vld [vmem:[#allocation7 + $0x68] sm:$0xff]   ;;  %v70_v24 = vshrl.u32 %v69_v23, 7  ;;  %s553_s16 = smov [#allocation8]  }
  0x29   :  { %v439_v6 = vld [vmem:[#allocation7 + $0x78] sm:$0xff]   ;;  %117 = vmatprep.subr.bf16.mxu0 %v436_v3  ;;  %v62_v9 = vpack.c.bf16 %v61_v5, %v61_v5  ;;  %v442_v10 = vld [vmem:[#allocation7 + $0x30] sm:$0xff]   ;;  %v444_v12 = vld [vmem:[#allocation7 + $0x28] sm:$0xff]   ;;  %s370_s17 = sshll.u32 %s553_s16, 4  ;;  %s371_s17 = int_to_ptr.vmem [resolvable:$true] %s370_s17 }
  0x2a   :  { %v440_v7 = vld [vmem:[#allocation7 + $0x38] sm:$0xff]   ;;  %402 = vmatprep.subr.bf16.mxu1 %v439_v6  ;;  %v445_v13 = vld [vmem:[#allocation7 + $0x60] sm:$0xff]   ;;  %v449_v17 = vld [vmem:[#allocation7 + $0x50] sm:$0xff]   ;;  %v71_v25 = vsub.s32 0, %v70_v24  ;;  %v75_v27 = vsub.s32 1, %v70_v24  ;;  %s519_s18 = scalar_lea.vmem %s371_s17, 128  ;;  %p524_p2 = scmp.lt.s32.totalorder %s371_s17, %s371_s17 }
  0x2b   :  { %403 = vmatpush3.bf16.msra.mxu1 %v440_v7  ;;  %v446_v14 = vld [vmem:[#allocation7 + $0x20] sm:$0xff]   ;;  %v447_v15 = vld [vmem:[#allocation7 + $0x58] sm:$0xff]   ;;  %v450_v18 = vld [vmem:[#allocation7 + $0x10] sm:$0xff]   ;;  %p520_p1 = scmp.ne.s32.totalorder %s371_s17, %s519_s18  ;;  %p525_p3 = scmp.lt.s32.totalorder %s519_s18, %s519_s18 }
  0x2c   :  { %118 = vmatpush1.bf16.msra.mxu0 %v438_v4  ;;  %404 = vmatprep.subr.bf16.mxu1 %v441_v8  ;;  %v448_v16 = vld [vmem:[#allocation7 + $0x18] sm:$0xff]   ;;  %v451_v19 = vld [vmem:[#allocation7 + $0x48] sm:$0xff]   ;;  %v453_v21 = vld [vmem:[#allocation7 + $0x40] sm:$0xff]  }
  0x2d   :  { %v452_v20 = vld [vmem:[#allocation7 + $0x8] sm:$0xff]   ;;  %v454_v22 = vld [vmem:[#allocation7] sm:$0xff]   ;;  %v67_v26 = vld [vmem:[%s610_s2] sm:$0x3]  ;;  %p526_p4 = por %p525_p3, %p524_p2 }
  0x2e   :  { %v72_v28 = vrot.slane %v67_v26, %v71_v25  ;;  %v76_v29 = vrot.slane %v67_v26, %v75_v27  ;;  %v385_v43 = vld [vmem:[%s612_s4] ss:$0 sm:$0xff]  ;;  %v345_v4 = vld [vmem:[%s612_s4 + $0x1] sm:$0x1]  ;;  %v349_v7 = vld [vmem:[%s612_s4 + $0x2] sm:$0x1] }
  0x2f   :  { %384 = vmatmul.mubr.msk.bf16.vlgmr.msra.gmra.mxu0 %vm99_vm0, %v62_v9  ;;  %405 = vmatpush3.bf16.msra.mxu1 %v442_v10  ;;  %p527_p5 = pnand %p526_p4, %p520_p1 }
  0x30   :  { %406 = vmatprep.subr.bf16.mxu1 %v443_v11 }
  0x33   :  { %407 = vmatpush3.bf16.msra.mxu1 %v444_v12 }
  0x34   :  { %408 = vmatprep.subr.bf16.mxu1 %v445_v13 }
  0x37   :  { %409 = vmatpush3.bf16.msra.mxu1 %v446_v14 }
  0x38   :  { %410 = vmatprep.subr.bf16.mxu1 %v447_v15 }
  0x3b   :  { %411 = vmatpush3.bf16.msra.mxu1 %v448_v16 }
  0x3c   :  { %412 = vmatprep.subr.bf16.mxu1 %v449_v17 }
  0x3f   :  { %413 = vmatpush3.bf16.msra.mxu1 %v450_v18 }
  0x40   :  { %414 = vmatprep.subr.bf16.mxu1 %v451_v19 }
  0x43   :  { %415 = vmatpush3.bf16.msra.mxu1 %v452_v20 }
  0x44   :  { %416 = vmatprep.subr.bf16.mxu1 %v453_v21 }
  0x47   :  { %417 = vmatpush3.bf16.msra.mxu1 %v454_v22 }
  0xef   :  { %v137_v30 = vpop.f32.mrf.mxu0 }
  0xf0   :  { %v138_v31 = vadd.f32 %v137_v30, %v72_v28 }
  0xf1   :  { %v139_v32 = vpop.f32.mrf.mxu0 }
  0xf2   :  { %vm144_vm1 = vcmp.gt.f32.partialorder %v138_v31, 0.0  ;;  %v146_v33 = vmul.f32 0.01, %v138_v31  ;;  %v140_v34 = vadd.f32 %v139_v32, %v76_v29 }
  0xf3   :  { %v141_v35 = vpop.f32.mrf.mxu0 }
  0xf4   :  { %vm145_vm2 = vcmp.gt.f32.partialorder %v140_v34, 0.0  ;;  %v147_v36 = vmul.f32 0.01, %v140_v34  ;;  %v148_v38 = vsel %vm144_vm1, %v138_v31, %v146_v33 }
  0xf5   :  { %v142_v37 = vpop.f32.mrf.mxu0  ;;  %v150_v41 = vpack.c.bf16 %v148_v38, %v148_v38 }
  0xf6   :  { %v149_v39 = vsel %vm145_vm2, %v140_v34, %v147_v36 }
  0xf7   :  { %v151_v40 = vpack.c.bf16 %v149_v39, %v149_v39 }
  0xf9   :  { %317 = vmatprep.mubr.bf16.mxu1 %v151_v40 }
  0xfa   :  { %318 = vmatmul.mubr.bf16.vlgmr.msra.gmra.mxu1 %v150_v41 }
 0x1ba   :  { %v418_v42 = vpop.f32.mrf.mxu1 }
 0x1bc   :  { %v419_v44 = vpop.f32.mrf.mxu1 }
 0x1bd   :  { %v420_v45 = vadd.f32 %v419_v44, %v418_v42 }
 0x1be   :  { %v421_v46 = vpop.f32.mrf.mxu1 }
 0x1bf   :  { %v320_v47 = vadd.f32 %v420_v45, %v385_v43 }
 0x1c0   :  { %v422_v48 = vpop.f32.mrf.mxu1 }
 0x1c1   :  { %vm325_vm3 = vcmp.gt.f32.partialorder %v320_v47, 0.0  ;;  %v326_v49 = vmul.f32 0.01, %v320_v47 }
 0x1c3   :  { %v327_v50 = vsel %vm325_vm3, %v320_v47, %v326_v49 }
 0x1c4   :  { %v328_v51 = vrot.slane %v327_v50, 4 }
 0x1c6   :  { %v329_v52 = vadd.f32 %v328_v51, %v327_v50 }
 0x1c8   :  { %v330_v53 = vrot.slane %v329_v52, 2 }
 0x1ca   :  { %v331_v54 = vadd.f32 %v330_v53, %v329_v52 }
 0x1cc   :  { %v332_v55 = vrot.slane %v331_v54, 1 }
 0x1ce   :  { %v333_v56 = vadd.f32 %v332_v55, %v331_v54 }
 0x1d0   :  { %v335_v57 = vmul.f32 0.125, %v333_v56 }
 0x1d2   :  { %v336_v58 = vsub.f32 %v327_v50, %v335_v57 }
 0x1d4   :  { %v337_v59 = vmul.f32 %v336_v58, %v336_v58 }
 0x1d6   :  { %v338_v60 = vrot.slane %v337_v59, 4 }
 0x1d8   :  { %v339_v61 = vadd.f32 %v338_v60, %v337_v59 }
 0x1da   :  { %v340_v62 = vrot.slane %v339_v61, 2 }
 0x1dc   :  { %v341_v63 = vadd.f32 %v340_v62, %v339_v61 }
 0x1de   :  { %v342_v0 = vrot.slane %v341_v63, 1 }
 0x1e0   :  { %v343_v1 = vadd.f32 %v342_v0, %v341_v63 }
 0x1e2   :  { %v344_v2 = vmul.f32 0.125, %v343_v1 }
 0x1e4   :  { %v346_v3 = vadd.f32 1e-05, %v344_v2 }
 0x1e6   :  { %455 = vrsqrt.f32 %v346_v3 }
 0x1f3   :  { %v456_v5 = vpop.eup %455 }
 0x1f4   :  { %v348_v6 = vmul.f32 %v456_v5, %v345_v4 }
 0x1f6   :  { %v350_v8 = vmul.f32 %v348_v6, %v335_v57  ;;  %v355_v9 = vrot.slane %v348_v6, %v71_v25 }
 0x1f8   :  { %v351_v10 = vsub.f32 %v349_v7, %v350_v8  ;;  %v356_v11 = vmul.f32 %v355_v9, %v327_v50 }
 0x1fa   :  { %v360_v12 = vrot.slane %v351_v10, %v71_v25 }
 0x1fc   :  { %v361_v13 = vadd.f32 %v360_v12, %v356_v11 }
 0x1fe   :  { %457 = vtanh.f32 %v361_v13 }
 0x20b   :  { %v458_v14 = vpop.eup %457 }
 0x20c   :  { %363 = vst [vmem:[#allocation8] sm:$0xff] %v458_v14 }
 0x20d   :  { %530 = shalt.err (!%p527_p5)
}
 0x20e   :  { %373 = dma.vmem_to_hbm [thread:$0]  %s371_s17, 128, %s613_s5, [#allocation4]  }
 0x20f   :  { %543 = dma.done.wait [#allocation4], 128  }
 0x210   :  { %544 = vsyncadd [#allocation4], 4294967168 }
 0x211   :  { %377 = vsyncpa [#allocation3], 1 }
 0x212   :  { %378 = vsyncpa [#allocation6], 1 }
 0x213   :  { %379 = vsyncpa [#allocation4], 1 }

</bundles_post_ra>
